<compile_context>
chip_gen: v7x
topology: tpu7x:2x2x1
jax: 0.10.0
libtpu: 0.0.40
codegen_flags: <defaults>
</compile_context>

<pallas_src>
import jax
import jax.numpy as jnp
from jax.experimental import pallas as pl
from jax.experimental.pallas import tpu as pltpu

# ---- model dims (match the PyTorch module) ----------------------------------
IN_FEATURES = 512          # resnet18 fc.in_features
HIDDEN = 256               # hidden_layer_PEs = [256]
NUM_CLASSES = 10           # len(classes)
OUT_PAD = 128              # lane-aligned padding for the class dimension
# NOTE: NEG_MASK is folded into the padded bias columns. It MUST stay f32 all
# the way through the softmax shift: if b2 or the pre-softmax logits are ever
# cast to bf16, -1e30 overflows to -inf and an all-padded row would produce
# inf - inf = NaN. The final bf16 cast happens only AFTER `shifted - lse`,
# where the padded columns are ~-1e30 (finite in bf16) and are sliced off.
NEG_MASK = -1e30
DROP_P = 0.5               # nn.Dropout(p=drop_p)
# TODO(synk): dropout is implemented as inference-mode identity (no RNG mask).

MAX_TILE_B = 1024          # rows per grid step; ~4 MiB double-buffered f32 x


def _round_up(n, m):
    return (n + m - 1) // m * m


def _cdiv(a, b):
    return -(-a // b)


def _mlp_kernel(x_ref, w1_ref, b1_ref, w2_ref, b2_ref, o_ref):
    """Fused: h = relu(x@W1+b1); logits = h@W2+b2_masked; out = log_softmax."""
    # f32 tile streamed from HBM; cast to bf16 only for the MXU (f32 accum).
    x = x_ref[...].astype(jnp.bfloat16)                          # (TB, IN)
    h = jnp.dot(x, w1_ref[...], preferred_element_type=jnp.float32)
    h = jnp.maximum(h + b1_ref[...], 0.0)                        # ReLU, f32
    # dropout: identity at inference time
    logits = jnp.dot(h.astype(jnp.bfloat16), w2_ref[...],
                     preferred_element_type=jnp.float32)
    logits = logits + b2_ref[...]                                # (TB, OUT_PAD), f32
    # padded class columns carry NEG_MASK via b2 -> exp() underflows to 0
    m = jnp.max(logits, axis=1, keepdims=True)
    shifted = logits - m
    lse = jnp.log(jnp.sum(jnp.exp(shifted), axis=1, keepdims=True))
    # columns 10..127 of the output contain ~NEG_MASK garbage; sliced off in
    # the wrapper -- do not consume the padded buffer directly.
    o_ref[...] = (shifted - lse).astype(o_ref.dtype)             # bf16 log-probs


def prepare_params(w1, b1, w2, b2):
    """One-time (load-time) padding / casting, hoisted out of the call path.

    w1: (IN_FEATURES, HIDDEN), b1: (HIDDEN,),
    w2: (HIDDEN, NUM_CLASSES), b2: (NUM_CLASSES,)   -- (in, out) layout.
    """
    w1_bf = w1.astype(jnp.bfloat16)                                    # (IN, H)
    b1_2d = b1.reshape(1, HIDDEN).astype(jnp.float32)                  # (1, H)
    w2_p = (jnp.zeros((HIDDEN, OUT_PAD), jnp.bfloat16)
            .at[:, :NUM_CLASSES].set(w2.astype(jnp.bfloat16)))         # (H, 128)
    # fold the class mask into the bias: padded columns get a huge negative
    # (f32 only -- see NEG_MASK note above).
    b2_p = (jnp.full((1, OUT_PAD), NEG_MASK, jnp.float32)
            .at[:, :NUM_CLASSES].set(b2.astype(jnp.float32)))          # (1, 128)
    return w1_bf, b1_2d, w2_p, b2_p


@jax.jit
def network_forward(x, w1_bf, b1_2d, w2_p, b2_p):
    """x: (B, ...) whose trailing dims flatten to IN_FEATURES. Returns (B, 10)."""
    B = x.shape[0]
    x2d = x.reshape(B, -1)                      # torch .view(B, -1); stays f32
    assert x2d.shape[1] == IN_FEATURES

    # Batch tile: multiple of 16 (bf16 output sublane packing), capped at
    # MAX_TILE_B, and sized to give >=2 grid steps whenever B allows so the
    # "parallel" axis can shard across both v7x TensorCores.
    tile_b = min(MAX_TILE_B, max(16, _round_up(_cdiv(B, 2), 16)))
    grid = (_cdiv(B, tile_b),)                  # ragged last block: no jnp.pad

    out_pad = pl.pallas_call(
        _mlp_kernel,
        out_shape=jax.ShapeDtypeStruct((B, OUT_PAD), jnp.bfloat16),
        grid=grid,
        in_specs=[
            pl.BlockSpec((tile_b, IN_FEATURES), lambda i: (i, 0)),   # x tile (f32)
            pl.BlockSpec((IN_FEATURES, HIDDEN), lambda i: (0, 0)),   # w1 resident
            pl.BlockSpec((1, HIDDEN), lambda i: (0, 0)),             # b1 resident
            pl.BlockSpec((HIDDEN, OUT_PAD), lambda i: (0, 0)),       # w2 resident
            pl.BlockSpec((1, OUT_PAD), lambda i: (0, 0)),            # b2 resident
        ],
        out_specs=pl.BlockSpec((tile_b, OUT_PAD), lambda i: (i, 0)),
        compiler_params=pltpu.CompilerParams(
            dimension_semantics=("parallel",),        # shard batch tiles on v7x
            vmem_limit_bytes=32 * 1024 * 1024,        # safe on v7x's smaller VMEM
        ),
    )(x2d, w1_bf, b1_2d, w2_p, b2_p)

    # Tiny (B, 10) slice + cast; fuses under jit. Consumers that only argmax
    # could keep the bf16 result directly.
    return out_pad[:, :NUM_CLASSES].astype(jnp.float32)


def init_params(key):
    """Deterministic init mimicking nn.Linear's U(-1/sqrt(fan_in), +1/sqrt(fan_in))."""
    k1, k2, k3, k4 = jax.random.split(key, 4)
    s1 = 1.0 / (IN_FEATURES ** 0.5)
    s2 = 1.0 / (HIDDEN ** 0.5)
    w1 = jax.random.uniform(k1, (IN_FEATURES, HIDDEN), jnp.float32, -s1, s1)
    b1 = jax.random.uniform(k2, (HIDDEN,), jnp.float32, -s1, s1)
    w2 = jax.random.uniform(k3, (HIDDEN, NUM_CLASSES), jnp.float32, -s2, s2)
    b2 = jax.random.uniform(k4, (NUM_CLASSES,), jnp.float32, -s2, s2)
    return w1, b1, w2, b2


def _reference_forward(x, w1, b1, w2, b2):
    """Pure-JAX reference (same bf16 matmul-input cast as the kernel)."""
    B = x.shape[0]
    x2d = x.reshape(B, -1).astype(jnp.bfloat16)
    h = jnp.dot(x2d, w1.astype(jnp.bfloat16),
                preferred_element_type=jnp.float32) + b1
    h = jnp.maximum(h, 0.0)
    logits = jnp.dot(h.astype(jnp.bfloat16), w2.astype(jnp.bfloat16),
                     preferred_element_type=jnp.float32) + b2
    return jax.nn.log_softmax(logits, axis=1)


if __name__ == "__main__":
    key = jax.random.PRNGKey(0)
    kx, kp = jax.random.split(key)

    # batch=32, features shaped (2, 16, 16) -> flattens to 512 = resnet18 fc.in_features
    # (B=32 -> tile_b=16, grid=(2,): exercises the multi-step parallel grid.)
    x = jax.random.normal(kx, (32, 2, 16, 16), jnp.float32)
    w1, b1, w2, b2 = init_params(kp)
    w1_bf, b1_2d, w2_p, b2_p = prepare_params(w1, b1, w2, b2)

    log_probs = network_forward(x, w1_bf, b1_2d, w2_p, b2_p)
    jax.block_until_ready(log_probs)

    # sanity: shape, rows (log-)sum to ~1 in prob space, matches pure-JAX reference
    assert log_probs.shape == (32, NUM_CLASSES)
    row_sums = jnp.exp(log_probs).sum(axis=1)
    assert bool(jnp.all(jnp.abs(row_sums - 1.0) < 3e-2))     # bf16 output tolerance
    ref = _reference_forward(x, w1, b1, w2, b2)
    assert bool(jnp.all(jnp.abs(log_probs - ref) < 1e-1))

    print("KERNEL_OK")
</pallas_src>

<mosaic_0001>
module attributes {stable_mosaic.version = 11 : i64} {
  func.func @_mlp_kernel(%arg0: i32, %arg1: memref<16x512xf32, #tpu.memory_space<vmem>>, %arg2: memref<512x256xbf16, #tpu.memory_space<vmem>>, %arg3: memref<1x256xf32, #tpu.memory_space<vmem>>, %arg4: memref<256x128xbf16, #tpu.memory_space<vmem>>, %arg5: memref<1x128xf32, #tpu.memory_space<vmem>>, %arg6: memref<16x128xbf16, #tpu.memory_space<vmem>>) attributes {dimension_semantics = [#tpu.dimension_semantics<parallel>], iteration_bounds = array<i64: 2>, scalar_prefetch = 0 : i64, scratch_operands = 0 : i64, tpu.core_type = #tpu.core_type<tc>, window_params = [{transform_indices = @transform_0, window_bounds = array<i64: 16, 512>}, {pipeline_mode = #tpu.pipeline_mode<synchronous>, transform_indices = @transform_1, window_bounds = array<i64: 512, 256>}, {pipeline_mode = #tpu.pipeline_mode<synchronous>, transform_indices = @transform_2, window_bounds = array<i64: 1, 256>}, {pipeline_mode = #tpu.pipeline_mode<synchronous>, transform_indices = @transform_3, window_bounds = array<i64: 256, 128>}, {pipeline_mode = #tpu.pipeline_mode<synchronous>, transform_indices = @transform_4, window_bounds = array<i64: 1, 128>}, {transform_indices = @transform_5, window_bounds = array<i64: 16, 128>}]} {
    %c0 = arith.constant 0 : index
    %c0_0 = arith.constant 0 : index
    %0 = vector.load %arg1[%c0, %c0_0] : memref<16x512xf32, #tpu.memory_space<vmem>>, vector<16x512xf32>
    %1 = arith.truncf %0 : vector<16x512xf32> to vector<16x512xbf16>
    %c0_1 = arith.constant 0 : index
    %c0_2 = arith.constant 0 : index
    %2 = vector.load %arg2[%c0_1, %c0_2] : memref<512x256xbf16, #tpu.memory_space<vmem>>, vector<512x256xbf16>
    %cst = arith.constant dense<0.000000e+00> : vector<16x256xf32>
    %3 = tpu.matmul %1, %2, %cst {dimension_numbers = #tpu.dot_dimension_numbers<[1], [0], [0], [1], [0, 0, 1, 1], [], []>} : vector<16x512xbf16>, vector<512x256xbf16>, vector<16x256xf32> -> vector<16x256xf32>
    %c0_3 = arith.constant 0 : index
    %c0_4 = arith.constant 0 : index
    %4 = vector.load %arg3[%c0_3, %c0_4] : memref<1x256xf32, #tpu.memory_space<vmem>>, vector<1x256xf32>
    %5 = vector.broadcast %4 : vector<1x256xf32> to vector<16x256xf32>
    %6 = arith.addf %3, %5 : vector<16x256xf32>
    %cst_5 = arith.constant 0.000000e+00 : f32
    %7 = vector.broadcast %cst_5 : f32 to vector<16x256xf32>
    %8 = arith.maximumf %6, %7 : vector<16x256xf32>
    %9 = arith.truncf %8 : vector<16x256xf32> to vector<16x256xbf16>
    %c0_6 = arith.constant 0 : index
    %c0_7 = arith.constant 0 : index
    %10 = vector.load %arg4[%c0_6, %c0_7] : memref<256x128xbf16, #tpu.memory_space<vmem>>, vector<256x128xbf16>
    %cst_8 = arith.constant dense<0.000000e+00> : vector<16x128xf32>
    %11 = tpu.matmul %9, %10, %cst_8 {dimension_numbers = #tpu.dot_dimension_numbers<[1], [0], [0], [1], [0, 0, 1, 1], [], []>} : vector<16x256xbf16>, vector<256x128xbf16>, vector<16x128xf32> -> vector<16x128xf32>
    %c0_9 = arith.constant 0 : index
    %c0_10 = arith.constant 0 : index
    %12 = vector.load %arg5[%c0_9, %c0_10] : memref<1x128xf32, #tpu.memory_space<vmem>>, vector<1x128xf32>
    %13 = vector.broadcast %12 : vector<1x128xf32> to vector<16x128xf32>
    %14 = arith.addf %11, %13 : vector<16x128xf32>
    %cst_11 = arith.constant dense<0xFF800000> : vector<16xf32>
    %15 = vector.multi_reduction <maximumf>, %14, %cst_11 [1] : vector<16x128xf32> to vector<16xf32>
    %16 = vector.shape_cast %15 : vector<16xf32> to vector<16x1xf32>
    %17 = vector.broadcast %16 : vector<16x1xf32> to vector<16x128xf32>
    %18 = arith.subf %14, %17 : vector<16x128xf32>
    %19 = math.exp %18 : vector<16x128xf32>
    %cst_12 = arith.constant dense<0.000000e+00> : vector<16xf32>
    %20 = vector.multi_reduction <add>, %19, %cst_12 [1] : vector<16x128xf32> to vector<16xf32>
    %21 = vector.shape_cast %20 : vector<16xf32> to vector<16x1xf32>
    %22 = math.log %21 : vector<16x1xf32>
    %23 = vector.broadcast %22 : vector<16x1xf32> to vector<16x128xf32>
    %24 = arith.subf %18, %23 : vector<16x128xf32>
    %25 = arith.truncf %24 : vector<16x128xf32> to vector<16x128xbf16>
    %c0_13 = arith.constant 0 : index
    %c0_14 = arith.constant 0 : index
    %26 = vector.load %arg6[%c0_13, %c0_14] : memref<16x128xbf16, #tpu.memory_space<vmem>>, vector<16x128xbf16>
    tpu.vector_store %arg6[%c0_13, %c0_14], %25 {strides = array<i32>} : memref<16x128xbf16, #tpu.memory_space<vmem>>, vector<16x128xbf16>,
    return
  }
  func.func @transform_0(%arg0: i32) -> (i32, i32) {
    %c0_i32 = arith.constant 0 : i32
    %c0_i32_0 = arith.constant 0 : i32
    return %arg0, %c0_i32 : i32, i32
  }
  func.func @transform_1(%arg0: i32) -> (i32, i32) {
    %c0_i32 = arith.constant 0 : i32
    %c0_i32_0 = arith.constant 0 : i32
    %c0_i32_1 = arith.constant 0 : i32
    return %c0_i32, %c0_i32_0 : i32, i32
  }
  func.func @transform_2(%arg0: i32) -> (i32, i32) {
    %c0_i32 = arith.constant 0 : i32
    %c0_i32_0 = arith.constant 0 : i32
    %c0_i32_1 = arith.constant 0 : i32
    return %c0_i32, %c0_i32_0 : i32, i32
  }
  func.func @transform_3(%arg0: i32) -> (i32, i32) {
    %c0_i32 = arith.constant 0 : i32
    %c0_i32_0 = arith.constant 0 : i32
    %c0_i32_1 = arith.constant 0 : i32
    return %c0_i32, %c0_i32_0 : i32, i32
  }
  func.func @transform_4(%arg0: i32) -> (i32, i32) {
    %c0_i32 = arith.constant 0 : i32
    %c0_i32_0 = arith.constant 0 : i32
    %c0_i32_1 = arith.constant 0 : i32
    return %c0_i32, %c0_i32_0 : i32, i32
  }
  func.func @transform_5(%arg0: i32) -> (i32, i32) {
    %c0_i32 = arith.constant 0 : i32
    %c0_i32_0 = arith.constant 0 : i32
    return %arg0, %c0_i32 : i32, i32
  }
}

</mosaic_0001>

<bundles_post_ra>
// kernel: network_forward.1
= control target key start
LH: loop header
LB: loop body
LE: loop exit
PB: predicated region body
PF: predicated region fallthrough
CT: control target
= control target key end

     0   :  { %s1293_s18 = smov 0   ;;  %s1572_s0 = inlined_call_operand.vmem [shape: f32[32,512], index: 0, kind: input, shape index: {}]   ;;  %s1573_s1 = inlined_call_operand.vmem [shape: bf16[512,256], index: 1, kind: input, shape index: {}]   ;;  %s1574_s2 = inlined_call_operand.vmem [shape: f32[1,256], index: 2, kind: input, shape index: {}]   ;;  %s1575_s3 = inlined_call_operand.vmem [shape: bf16[256,128], index: 3, kind: input, shape index: {}]   ;;  %s1576_s4 = inlined_call_operand.vmem [shape: f32[1,128], index: 4, kind: input, shape index: {}]   ;;  %s1577_s5 = inlined_call_operand.vmem [shape: bf16[32,128], index: 5, kind: output, shape index: {}]  }
   0x1 LB: > { %s994_s19 = sadd.s32 4294967295, %s1261_s18   ;;  %p998_p0 = scmp.ge.s32.totalorder %s1261_s18, 1  ;;  %s1261_s18 = sphi %s1293_s18, %s15_s18  }
   0x2   : > { %p189_p1 = scmp.lt.s32.totalorder %s1261_s18, 3 }
   0x4   : > { %p190_p2 = pnand %p998_p0, %p189_p1 }
   0x5   : > { %v1135_v0 = vld [vmem:[%s1573_s1 + $0x4] ss:$8 sps:$4 sm:$0xff] (!%p190_p2)   ;;  %v1139_v2 = vld [vmem:[%s1573_s1] ss:$8 sps:$4 sm:$0xff] (!%p190_p2)   ;;  %v1141_v4 = vld [vmem:[%s1573_s1 + $0x14] ss:$8 sps:$4 sm:$0xff] (!%p190_p2)  }
   0x6   : > { %193 = sbr.rel (%p190_p2) target bundleno = 832 (0x340), region = 40  ;;  %v1137_v1 = vld [vmem:[%s1573_s1 + $0x104] ss:$8 sps:$4 sm:$0xff] (!%p190_p2)   ;;  %640 = vmatprep.subr.bf16.mxu1 (!%p190_p2), %v1135_v0  ;;  %v1140_v3 = vld [vmem:[%s1573_s1 + $0x100] ss:$8 sps:$4 sm:$0xff] (!%p190_p2)   ;;  %s999_s9 = sshll.u32 (!%p190_p2), %s994_s19, 1 }
   0x7   : > { %683 = vmatprep.subr.bf16.mxu0 (!%p190_p2), %v1137_v1  ;;  %641 = vmatpush1.bf16.msra.mxu1 (!%p190_p2), %v1139_v2  ;;  %v1143_v5 = vld [vmem:[%s1573_s1 + $0x114] ss:$8 sps:$4 sm:$0xff] (!%p190_p2)   ;;  %v1145_v6 = vld [vmem:[%s1573_s1 + $0x10] ss:$8 sps:$4 sm:$0xff] (!%p190_p2)   ;;  %v1147_v8 = vld [vmem:[%s1573_s1 + $0x24] ss:$8 sps:$4 sm:$0xff] (!%p190_p2)  }
   0x8   : > { %684 = vmatpush1.bf16.msra.mxu0 (!%p190_p2), %v1140_v3  ;;  %642 = vmatprep.subr.bf16.mxu1 (!%p190_p2), %v1141_v4  ;;  %v1146_v7 = vld [vmem:[%s1573_s1 + $0x110] ss:$8 sps:$4 sm:$0xff] (!%p190_p2)   ;;  %v1149_v9 = vld [vmem:[%s1573_s1 + $0x124] ss:$8 sps:$4 sm:$0xff] (!%p190_p2)   ;;  %v1151_v10 = vld [vmem:[%s1573_s1 + $0x20] ss:$8 sps:$4 sm:$0xff] (!%p190_p2)  }
   0x9   : > { %685 = vmatprep.subr.bf16.mxu0 (!%p190_p2), %v1143_v5  ;;  %v1152_v11 = vld [vmem:[%s1573_s1 + $0x120] ss:$8 sps:$4 sm:$0xff] (!%p190_p2)   ;;  %v1153_v12 = vld [vmem:[%s1573_s1 + $0x34] ss:$8 sps:$4 sm:$0xff] (!%p190_p2)   ;;  %v1157_v14 = vld [vmem:[%s1573_s1 + $0x30] ss:$8 sps:$4 sm:$0xff] (!%p190_p2)  }
   0xa   : > { %v1155_v13 = vld [vmem:[%s1573_s1 + $0x134] ss:$8 sps:$4 sm:$0xff] (!%p190_p2)   ;;  %v1158_v15 = vld [vmem:[%s1573_s1 + $0x130] ss:$8 sps:$4 sm:$0xff] (!%p190_p2)   ;;  %v1159_v16 = vld [vmem:[%s1573_s1 + $0x44] ss:$8 sps:$4 sm:$0xff] (!%p190_p2)  }
   0xb   : > { %643 = vmatpush1.bf16.msra.mxu1 (!%p190_p2), %v1145_v6  ;;  %v1161_v17 = vld [vmem:[%s1573_s1 + $0x144] ss:$8 sps:$4 sm:$0xff] (!%p190_p2)   ;;  %v1163_v18 = vld [vmem:[%s1573_s1 + $0x40] ss:$8 sps:$4 sm:$0xff] (!%p190_p2)   ;;  %v1165_v20 = vld [vmem:[%s1573_s1 + $0x54] ss:$8 sps:$4 sm:$0xff] (!%p190_p2)  }
   0xc   : > { %686 = vmatpush1.bf16.msra.mxu0 (!%p190_p2), %v1146_v7  ;;  %644 = vmatprep.subr.bf16.mxu1 (!%p190_p2), %v1147_v8  ;;  %v1164_v19 = vld [vmem:[%s1573_s1 + $0x140] ss:$8 sps:$4 sm:$0xff] (!%p190_p2)   ;;  %v1167_v21 = vld [vmem:[%s1573_s1 + $0x154] ss:$8 sps:$4 sm:$0xff] (!%p190_p2)   ;;  %v1169_v22 = vld [vmem:[%s1573_s1 + $0x50] ss:$8 sps:$4 sm:$0xff] (!%p190_p2)  }
   0xd   : > { %687 = vmatprep.subr.bf16.mxu0 %v1149_v9  ;;  %v1170_v23 = vld [vmem:[%s1573_s1 + $0x150] ss:$8 sps:$4 sm:$0xff]   ;;  %v1171_v24 = vld [vmem:[%s1573_s1 + $0x64] ss:$8 sps:$4 sm:$0xff]   ;;  %v1175_v26 = vld [vmem:[%s1573_s1 + $0x60] ss:$8 sps:$4 sm:$0xff]  }
   0xe   : > { %v1173_v25 = vld [vmem:[%s1573_s1 + $0x164] ss:$8 sps:$4 sm:$0xff]   ;;  %v1176_v27 = vld [vmem:[%s1573_s1 + $0x160] ss:$8 sps:$4 sm:$0xff]   ;;  %v1177_v28 = vld [vmem:[%s1573_s1 + $0x74] ss:$8 sps:$4 sm:$0xff]  }
   0xf   : > { %645 = vmatpush1.bf16.msra.mxu1 %v1151_v10  ;;  %v1179_v29 = vld [vmem:[%s1573_s1 + $0x174] ss:$8 sps:$4 sm:$0xff]   ;;  %v1181_v30 = vld [vmem:[%s1573_s1 + $0x70] ss:$8 sps:$4 sm:$0xff]   ;;  %v1183_v32 = vld [vmem:[%s1573_s1 + $0x84] ss:$8 sps:$4 sm:$0xff]  }
  0x10   : > { %688 = vmatpush1.bf16.msra.mxu0 %v1152_v11  ;;  %646 = vmatprep.subr.bf16.mxu1 %v1153_v12  ;;  %v1182_v31 = vld [vmem:[%s1573_s1 + $0x170] ss:$8 sps:$4 sm:$0xff]   ;;  %p219_p3 = scmp.lt.s32.totalorder %s999_s9, 3  ;;  %v1185_v33 = vld [vmem:[%s1573_s1 + $0x184] ss:$8 sps:$4 sm:$0xff]  }
  0x11   : > { %689 = vmatprep.subr.bf16.mxu0 %v1155_v13  ;;  %v1187_v34 = vld [vmem:[%s1573_s1 + $0x80] ss:$8 sps:$4 sm:$0xff]   ;;  %v1189_v36 = vld [vmem:[%s1573_s1 + $0x94] ss:$8 sps:$4 sm:$0xff]   ;;  %v1193_v38 = vld [vmem:[%s1573_s1 + $0x90] ss:$8 sps:$4 sm:$0xff]  }
  0x12   : > { %v1188_v35 = vld [vmem:[%s1573_s1 + $0x180] ss:$8 sps:$4 sm:$0xff]   ;;  %s1579_s9 = smov (!%p219_p3, %s999_s9), 3  ;;  %v1191_v37 = vld [vmem:[%s1573_s1 + $0x194] ss:$8 sps:$4 sm:$0xff]  }
  0x13   : > { %647 = vmatpush1.bf16.msra.mxu1 %v1157_v14  ;;  %v1194_v39 = vld [vmem:[%s1573_s1 + $0x190] ss:$8 sps:$4 sm:$0xff]   ;;  %v1195_v40 = vld [vmem:[%s1573_s1 + $0xa4] ss:$8 sps:$4 sm:$0xff]   ;;  %s1089_s8 = sshll.u32 %s1579_s9, 5  ;;  %s1003_s28 = sshll.u32 %s1579_s9, 2 }
  0x14   : > { %690 = vmatpush1.bf16.msra.mxu0 %v1158_v15  ;;  %648 = vmatprep.subr.bf16.mxu1 %v1159_v16  ;;  %v1197_v41 = vld [vmem:[%s1573_s1 + $0x1a4] ss:$8 sps:$4 sm:$0xff]   ;;  %v1199_v42 = vld [vmem:[%s1573_s1 + $0xa0] ss:$8 sps:$4 sm:$0xff]   ;;  %s1441_s19 = scalar_lea.vmem %s1572_s0, %s1089_s8  ;;  %v1201_v44 = vld [vmem:[%s1573_s1 + $0xb4] ss:$8 sps:$4 sm:$0xff]   ;;  %s229_s6 = scalar_lea.vmem %s1577_s5, %s1003_s28 }
  0x15   : > { %691 = vmatprep.subr.bf16.mxu0 %v1161_v17  ;;  %v1200_v43 = vld [vmem:[%s1573_s1 + $0x1a0] ss:$8 sps:$4 sm:$0xff]   ;;  %v1203_v45 = vld [vmem:[%s1573_s1 + $0x1b4] ss:$8 sps:$4 sm:$0xff]   ;;  %v1205_v50 = vld [vmem:[%s1573_s1 + $0xb0] ss:$8 sps:$4 sm:$0xff]  }
  0x16   : > { %v233_v46 = vld [vmem:[%s1441_s19 + $0x8] sm:$0xff]  ;;  %v235_v48 = vld [vmem:[%s1441_s19 + $0x18] sm:$0xff]  ;;  %v232_v6 = vld [vmem:[%s1441_s19] sm:$0xff] }
  0x17   : > { %649 = vmatpush1.bf16.msra.mxu1 %v1163_v18  ;;  %v237_v47 = vld [vmem:[%s1441_s19 + $0x28] sm:$0xff]  ;;  %v239_v49 = vld [vmem:[%s1441_s19 + $0x38] sm:$0xff]  ;;  %v236_v7 = vld [vmem:[%s1441_s19 + $0x20] sm:$0xff] }
  0x18   : > { %692 = vmatpush1.bf16.msra.mxu0 %v1164_v19  ;;  %650 = vmatprep.subr.bf16.mxu1 %v1165_v20  ;;  %v1206_v51 = vld [vmem:[%s1573_s1 + $0x1b0] ss:$8 sps:$4 sm:$0xff]   ;;  %v1207_v52 = vld [vmem:[%s1573_s1 + $0xc4] ss:$8 sps:$4 sm:$0xff]   ;;  %v241_v53 = vpack.c.bf16 %v237_v47, %v233_v46  ;;  %v243_v54 = vpack.c.bf16 %v239_v49, %v235_v48  ;;  %v1211_v56 = vld [vmem:[%s1573_s1 + $0xc0] ss:$8 sps:$4 sm:$0xff]   ;;  %v240_v11 = vpack.c.bf16 %v236_v7, %v232_v6 }
  0x19   : > { %693 = vmatprep.subr.bf16.mxu0 %v1167_v21  ;;  %v1209_v55 = vld [vmem:[%s1573_s1 + $0x1c4] ss:$8 sps:$4 sm:$0xff]   ;;  %v1212_v57 = vld [vmem:[%s1573_s1 + $0x1c0] ss:$8 sps:$4 sm:$0xff]   ;;  %v1213_v58 = vld [vmem:[%s1573_s1 + $0xd4] ss:$8 sps:$4 sm:$0xff]  }
  0x1a   : > { %672 = vmatprep.mubr.bf16.mxu1 %v241_v53  ;;  %715 = vmatprep.mubr.bf16.mxu0 %v243_v54  ;;  %v1215_v59 = vld [vmem:[%s1573_s1 + $0x1d4] ss:$8 sps:$4 sm:$0xff]   ;;  %v1217_v60 = vld [vmem:[%s1573_s1 + $0xd0] ss:$8 sps:$4 sm:$0xff]   ;;  %v1219_v62 = vld [vmem:[%s1573_s1 + $0xe4] ss:$8 sps:$4 sm:$0xff]  }
  0x1b   : > { %651 = vmatpush1.bf16.msra.mxu1 %v1169_v22  ;;  %v1218_v61 = vld [vmem:[%s1573_s1 + $0x1d0] ss:$8 sps:$4 sm:$0xff]   ;;  %v1221_v63 = vld [vmem:[%s1573_s1 + $0x1e4] ss:$8 sps:$4 sm:$0xff]   ;;  %v1223_v0 = vld [vmem:[%s1573_s1 + $0xe0] ss:$8 sps:$4 sm:$0xff]  }
  0x1c   : > { %694 = vmatpush1.bf16.msra.mxu0 %v1170_v23  ;;  %652 = vmatprep.subr.bf16.mxu1 %v1171_v24  ;;  %v1224_v1 = vld [vmem:[%s1573_s1 + $0x1e0] ss:$8 sps:$4 sm:$0xff]   ;;  %v1225_v2 = vld [vmem:[%s1573_s1 + $0xf4] ss:$8 sps:$4 sm:$0xff]   ;;  %v1229_v4 = vld [vmem:[%s1573_s1 + $0xf0] ss:$8 sps:$4 sm:$0xff]  }
  0x1d   : > { %695 = vmatprep.subr.bf16.mxu0 %v1173_v25  ;;  %v1227_v3 = vld [vmem:[%s1573_s1 + $0x1f4] ss:$8 sps:$4 sm:$0xff]   ;;  %v1230_v5 = vld [vmem:[%s1573_s1 + $0x1f0] ss:$8 sps:$4 sm:$0xff]   ;;  %v1231_v10 = vld [vmem:[%s1575_s3 + $0x40] sm:$0xff]  }
  0x1e   : > { %v234_v8 = vld [vmem:[%s1441_s19 + $0x10] sm:$0xff]  ;;  %v1232_v13 = vld [vmem:[%s1575_s3] sm:$0xff]   ;;  %v1233_v14 = vld [vmem:[%s1575_s3 + $0x48] sm:$0xff]  }
  0x1f   : > { %653 = vmatpush1.bf16.msra.mxu1 %v1175_v26  ;;  %v238_v9 = vld [vmem:[%s1441_s19 + $0x30] sm:$0xff]  ;;  %v1234_v15 = vld [vmem:[%s1575_s3 + $0x8] sm:$0xff]   ;;  %v1237_v18 = vld [vmem:[%s1575_s3 + $0x58] sm:$0xff]  }
  0x20   : > { %696 = vmatpush1.bf16.msra.mxu0 %v1176_v27  ;;  %654 = vmatprep.subr.bf16.mxu1 %v1177_v28  ;;  %v242_v12 = vpack.c.bf16 %v238_v9, %v234_v8  ;;  %v1235_v16 = vld [vmem:[%s1575_s3 + $0x50] sm:$0xff]   ;;  %v1238_v19 = vld [vmem:[%s1575_s3 + $0x18] sm:$0xff]   ;;  %v1239_v20 = vld [vmem:[%s1575_s3 + $0x60] sm:$0xff]   ;;  %v310_v28 = vlaneseq }
  0x21   : > { %697 = vmatprep.subr.bf16.mxu0 %v1179_v29  ;;  %v1236_v17 = vld [vmem:[%s1575_s3 + $0x10] sm:$0xff]   ;;  %v1240_v21 = vld [vmem:[%s1575_s3 + $0x20] sm:$0xff]   ;;  %v1241_v22 = vld [vmem:[%s1575_s3 + $0x68] sm:$0xff]  }
  0x22   : > { %v1242_v23 = vld [vmem:[%s1575_s3 + $0x28] sm:$0xff]   ;;  %v1243_v24 = vld [vmem:[%s1575_s3 + $0x70] sm:$0xff]   ;;  %v1245_v26 = vld [vmem:[%s1575_s3 + $0x78] sm:$0xff]   ;;  %v311_v29 = vshrl.u32 %v310_v28, 7 }
  0x23   : > { %655 = vmatpush1.bf16.msra.mxu1 %v1181_v30  ;;  %v1244_v25 = vld [vmem:[%s1575_s3 + $0x30] sm:$0xff]   ;;  %v1246_v27 = vld [vmem:[%s1575_s3 + $0x38] sm:$0xff]  }
  0x24   : > { %698 = vmatpush1.bf16.msra.mxu0 %v1182_v31  ;;  %656 = vmatprep.subr.bf16.mxu1 %v1183_v32  ;;  %v312_v30 = vsub.s32 0, %v311_v29  ;;  %v308_v31 = vld [vmem:[%s1574_s2] sm:$0x3]  ;;  %v316_v32 = vsub.s32 1, %v311_v29 }
  0x25   : > { %699 = vmatprep.subr.bf16.mxu0 %v1185_v33 }
  0x26   : > { %v313_v33 = vrot.slane %v308_v31, %v312_v30 }
  0x27   : > { %657 = vmatpush1.bf16.msra.mxu1 %v1187_v34  ;;  %v317_v34 = vrot.slane %v308_v31, %v316_v32 }
  0x28   : > { %700 = vmatpush1.bf16.msra.mxu0 %v1188_v35  ;;  %658 = vmatprep.subr.bf16.mxu1 %v1189_v36 }
  0x29   : > { %701 = vmatprep.subr.bf16.mxu0 %v1191_v37 }
  0x2b   : > { %659 = vmatpush1.bf16.msra.mxu1 %v1193_v38 }
  0x2c   : > { %702 = vmatpush1.bf16.msra.mxu0 %v1194_v39  ;;  %660 = vmatprep.subr.bf16.mxu1 %v1195_v40 }
  0x2d   : > { %703 = vmatprep.subr.bf16.mxu0 %v1197_v41 }
  0x2f   : > { %661 = vmatpush1.bf16.msra.mxu1 %v1199_v42 }
  0x30   : > { %704 = vmatpush1.bf16.msra.mxu0 %v1200_v43  ;;  %662 = vmatprep.subr.bf16.mxu1 %v1201_v44 }
  0x31   : > { %705 = vmatprep.subr.bf16.mxu0 %v1203_v45 }
  0x33   : > { %663 = vmatpush1.bf16.msra.mxu1 %v1205_v50 }
  0x34   : > { %706 = vmatpush1.bf16.msra.mxu0 %v1206_v51  ;;  %664 = vmatprep.subr.bf16.mxu1 %v1207_v52 }
  0x35   : > { %707 = vmatprep.subr.bf16.mxu0 %v1209_v55 }
  0x37   : > { %665 = vmatpush1.bf16.msra.mxu1 %v1211_v56 }
  0x38   : > { %708 = vmatpush1.bf16.msra.mxu0 %v1212_v57  ;;  %666 = vmatprep.subr.bf16.mxu1 %v1213_v58 }
  0x39   : > { %709 = vmatprep.subr.bf16.mxu0 %v1215_v59  ;;  %v1068_v59 = vld [vmem:[%s1576_s4] ss:$0 sm:$0xff] }
  0x3b   : > { %667 = vmatpush1.bf16.msra.mxu1 %v1217_v60 }
  0x3c   : > { %710 = vmatpush1.bf16.msra.mxu0 %v1218_v61  ;;  %668 = vmatprep.subr.bf16.mxu1 %v1219_v62 }
  0x3d   : > { %711 = vmatprep.subr.bf16.mxu0 %v1221_v63 }
  0x3f   : > { %669 = vmatpush1.bf16.msra.mxu1 %v1223_v0 }
  0x40   : > { %712 = vmatpush1.bf16.msra.mxu0 %v1224_v1  ;;  %670 = vmatprep.subr.bf16.mxu1 %v1225_v2 }
  0x41   : > { %713 = vmatprep.subr.bf16.mxu0 %v1227_v3 }
  0x43   : > { %671 = vmatpush1.bf16.msra.mxu1 %v1229_v4 }
  0x44   : > { %714 = vmatpush1.bf16.msra.mxu0 %v1230_v5  ;;  %1097 = vmatprep.subr.bf16.mxu1 %v1231_v10 }
  0x46   : > { %673 = vmatmul.mubr.bf16.vlgmr.msra.gmra.mrb[0].mxu1 %v240_v11 }
  0x47   : > { %716 = vmatmul.mubr.bf16.vlgmr.msra.gmra.mrb[0].mxu0 %v242_v12  ;;  %1098 = vmatpush3.bf16.msra.mxu1 %v1232_v13 }
  0x48   : > { %1099 = vmatprep.subr.bf16.mxu1 %v1233_v14 }
  0x4b   : > { %1100 = vmatpush3.bf16.msra.mxu1 %v1234_v15 }
  0x4c   : > { %1101 = vmatprep.subr.bf16.mxu1 %v1235_v16 }
  0x4f   : > { %1102 = vmatpush3.bf16.msra.mxu1 %v1236_v17 }
  0x50   : > { %1103 = vmatprep.subr.bf16.mxu1 %v1237_v18 }
  0x53   : > { %1104 = vmatpush3.bf16.msra.mxu1 %v1238_v19 }
  0x54   : > { %1105 = vmatprep.subr.bf16.mxu1 %v1239_v20 }
  0x57   : > { %1106 = vmatpush3.bf16.msra.mxu1 %v1240_v21 }
  0x58   : > { %1107 = vmatprep.subr.bf16.mxu1 %v1241_v22 }
  0x5b   : > { %1108 = vmatpush3.bf16.msra.mxu1 %v1242_v23 }
  0x5c   : > { %1109 = vmatprep.subr.bf16.mxu1 %v1243_v24 }
  0x5f   : > { %1110 = vmatpush3.bf16.msra.mxu1 %v1244_v25 }
  0x60   : > { %1111 = vmatprep.subr.bf16.mxu1 %v1245_v26 }
  0x63   : > { %1112 = vmatpush3.bf16.msra.mxu1 %v1246_v27 }
 0x119   : > { %v674_v35 = vpop.f32.mrb[0].mxu1 }
 0x11a   : > { %v717_v36 = vpop.f32.mrb[0].mxu0  ;;  %v675_v37 = vadd.f32 %v674_v35, %v313_v33  ;;  %v676_v38 = vpop.f32.mrb[1].mxu1 }
 0x11b   : > { %v719_v39 = vpop.f32.mrb[1].mxu0  ;;  %v677_v40 = vadd.f32 %v676_v38, %v317_v34  ;;  %v678_v41 = vpop.f32.mrb[2].mxu1 }
 0x11c   : > { %v721_v42 = vpop.f32.mrb[2].mxu0  ;;  %v718_v43 = vadd.f32 %v717_v36, %v675_v37  ;;  %v679_v44 = vadd.f32 %v678_v41, %v313_v33  ;;  %v680_v45 = vpop.f32.mrb[3].mxu1 }
 0x11d   : > { %v723_v46 = vpop.f32.mrb[3].mxu0  ;;  %v720_v47 = vadd.f32 %v719_v39, %v677_v40  ;;  %v681_v48 = vadd.f32 %v680_v45, %v317_v34 }
 0x11e   : > { %v722_v49 = vadd.f32 %v721_v42, %v679_v44  ;;  %v726_v51 = vmax.f32 %v718_v43, 0.0 }
 0x11f   : > { %v724_v50 = vadd.f32 %v723_v46, %v681_v48  ;;  %v727_v53 = vmax.f32 %v720_v47, 0.0 }
 0x120   : > { %v728_v52 = vmax.f32 %v722_v49, 0.0 }
 0x121   : > { %v729_v54 = vmax.f32 %v724_v50, 0.0 }
 0x122   : > { %v730_v55 = vpack.c.bf16 %v728_v52, %v726_v51 }
 0x123   : > { %v731_v56 = vpack.c.bf16 %v729_v54, %v727_v53 }
 0x125   : > { %899 = vmatprep.mubr.bf16.mxu1 %v731_v56 }
 0x126   : > { %900 = vmatmul.mubr.bf16.vlgmr.msra.gmra.mrb[4].mxu1 %v730_v55 }
 0x1f9   : > { %v1113_v57 = vpop.f32.mrb[4].mxu1 }
 0x1fa   : > { %v1114_v58 = vpop.f32.mrb[5].mxu1 }
 0x1fb   : > { %v1115_v60 = vadd.f32 %v1114_v58, %v1113_v57  ;;  %v1116_v61 = vpop.f32.mrb[6].mxu1 }
 0x1fc   : > { %v1117_v62 = vpop.f32.mrb[7].mxu1 }
 0x1fd   : > { %v1118_v63 = vadd.f32 %v1117_v62, %v1116_v61  ;;  %v902_v0 = vadd.f32 %v1115_v60, %v1068_v59 }
 0x1ff   : > { %908 = vmax.xlane.f32.xlu0 %v902_v0  ;;  %v905_v1 = vadd.f32 %v1118_v63, %v1068_v59 }
 0x203   : > { %910 = vmax.xlane.f32.xlu0 %v905_v1 }
 0x28c   : > { %v909_v2 = vpop.xlane.xlu0 %908 }
 0x28d   : > { %v912_v3 = vsub.f32 %v902_v0, %v909_v2 }
 0x28f   : > { %v914_v4 = vmul.f32 1.442695, %v912_v3 }
 0x290   : > { %v911_v5 = vpop.xlane.xlu0 %910 }
 0x291   : > { %v913_v6 = vsub.f32 %v905_v1, %v911_v5  ;;  %1247 = vpow2.f32 %v914_v4 }
 0x293   : > { %v916_v7 = vmul.f32 1.442695, %v913_v6 }
 0x295   : > { %1249 = vpow2.f32 %v916_v7 }
 0x29b   : > { %v1248_v8 = vpop.eup %1247 }
 0x29c   : > { %918 = vadd.xlane.f32.xlu1 %v1248_v8 }
 0x29f   : > { %v1250_v9 = vpop.eup %1249 }
 0x2a0   : > { %920 = vadd.xlane.f32.xlu1 %v1250_v9 }
 0x329   : > { %v919_v10 = vpop.xlane.xlu1 %918 }
 0x32a   : > { %1251 = vlog2.f32 %v919_v10 }
 0x32d   : > { %v921_v11 = vpop.xlane.xlu1 %920 }
 0x32e   : > { %1253 = vlog2.f32 %v921_v11 }
 0x334   : > { %v1252_v12 = vpop.eup %1251 }
 0x335   : > { %v923_v13 = vmul.f32 0.6931472, %v1252_v12 }
 0x337   : > { %v926_v16 = vsub.f32 %v912_v3, %v923_v13 }
 0x338   : > { %v1254_v14 = vpop.eup %1253 }
 0x339   : > { %v925_v15 = vmul.f32 0.6931472, %v1254_v14 }
 0x33b   : > { %v927_v17 = vsub.f32 %v913_v6, %v925_v15 }
 0x33d   : > { %v1095_v18 = vpack.c.bf16 %v927_v17, %v926_v16 }
 0x33f   : > { %1096 = vst [vmem:[%s229_s6] sm:$0xff] %v1095_v18  }
 0x340 PF: > { %s15_s18 = sadd.s32 1, %s1261_s18  }
 0x341   : > { %p12_p4 = scmp.ge.s32.totalorder %s15_s18, 4  }
 0x343   :  { %14 = sbr.rel (!%p12_p4) target bundleno = 1 (0x1), region = 70 }

</bundles_post_ra>
